<compile_context>
chip_gen: v6e
topology: v6e:2x2x1
jax: 0.10.0
libtpu: 0.0.40
codegen_flags: <defaults>
</compile_context>

<pallas_src>
import functools

import jax
import jax.numpy as jnp
from jax import lax
from jax.experimental import pallas as pl
from jax.experimental.pallas import tpu as pltpu


def _round_up(a, m):
    return (a + m - 1) // m * m


def _center_loss_kernel(x_ref, labels_ref, centers_ref, out_ref,
                        *, tm, num_classes, batch_size, has_pad):
    pid = pl.program_id(0)

    x = x_ref[...]                      # (tm, D)  f32
    labels = labels_ref[...]            # (tm, 1)  int32
    centers = centers_ref[...]          # (C, D)   f32, resident block

    # Vectorized gather of centers[labels]: one-hot (tm, C) on the VPU, then a
    # single MXU matmul.  Exact row selection (one-hot LHS), no serial loop.
    class_ids = lax.broadcasted_iota(jnp.int32, (tm, num_classes), 1)
    one_hot = (class_ids == labels).astype(jnp.float32)                 # (tm, C)
    g = jnp.dot(one_hot, centers, preferred_element_type=jnp.float32)   # (tm, D)

    # Fused per-row squared distance: one cross-lane reduce instead of three.
    diff = x - g
    d = jnp.clip(jnp.sum(diff * diff, axis=-1, keepdims=True), 1e-12, 1e12)

    # Clamp-after-mask semantics: the C-1 masked-out zeros in each row of the
    # PyTorch distmat clamp to 1e-12 and still contribute to the final sum.
    per_row = d + jnp.float32((num_classes - 1) * 1e-12)                # (tm, 1)

    def _write(partial):
        # Lane-dense partial-sum tile; wrapper reads [:, 0, 0].
        out_ref[...] = jnp.zeros((1, 8, 128), jnp.float32) + partial

    if has_pad:
        last = pl.num_programs(0) - 1

        @pl.when(pid != last)
        def _():
            _write(jnp.sum(per_row))

        @pl.when(pid == last)
        def _():
            # Only the last tile can contain padded rows.
            row = lax.broadcasted_iota(jnp.int32, (tm, 1), 0)
            valid = (pid * tm + row) < batch_size
            _write(jnp.sum(jnp.where(valid, per_row, 0.0)))
    else:
        _write(jnp.sum(per_row))


def _vmem_estimate(tm, feat_dim, num_classes):
    return (2 * tm * feat_dim * 4            # x tiles, double-buffered
            + 2 * tm * 128 * 4               # labels tiles (lane-padded)
            + 2 * num_classes * feat_dim * 4  # resident centers (2 buffers)
            + tm * num_classes * 4           # one-hot temporary
            + 2 * tm * feat_dim * 4          # gathered centers / diff temps
            + 2 * 8 * 128 * 4)               # partial-sum output blocks


def _center_loss_pallas(x, centers, labels, scale, block_rows):
    x = x.astype(jnp.float32)
    centers = centers.astype(jnp.float32)
    B, D = x.shape
    C, _ = centers.shape

    # Largest batch tile that fits a conservative VMEM budget (safe under
    # v5e's 16 MiB default scoped limit and v7x's 64 MiB physical VMEM).
    vmem_budget = 12 << 20
    tm = min(_round_up(B, 8), max(8, _round_up(block_rows, 8)))
    while tm > 8 and _vmem_estimate(tm, D, C) > vmem_budget:
        tm = max(8, _round_up(tm // 2, 8))
    # TODO(synk): when 2*C*D*4 alone exceeds the budget, keep centers in HBM
    # (memory_space=pl.ANY) and DMA-gather only the tm labeled rows per tile.

    b_pad = _round_up(B, tm)
    num_tiles = b_pad // tm
    has_pad = b_pad != B

    if has_pad:
        x = jnp.pad(x, ((0, b_pad - B), (0, 0)))
    labels2d = jnp.zeros((b_pad, 1), jnp.int32).at[:B, 0].set(
        labels.astype(jnp.int32))

    kernel = functools.partial(
        _center_loss_kernel, tm=tm, num_classes=C, batch_size=B,
        has_pad=has_pad)

    vmem_limit = int(min(max(2 * _vmem_estimate(tm, D, C) + (2 << 20),
                             16 << 20), 40 << 20))

    partials = pl.pallas_call(
        kernel,
        out_shape=jax.ShapeDtypeStruct((num_tiles, 8, 128), jnp.float32),
        grid=(num_tiles,),
        in_specs=[
            pl.BlockSpec((tm, D), lambda i: (i, 0)),   # x batch tile
            pl.BlockSpec((tm, 1), lambda i: (i, 0)),   # labels tile (VMEM)
            # centers resident: constant index_map -> no per-step re-DMA.
            pl.BlockSpec((C, D), lambda i: (0, 0)),
        ],
        out_specs=pl.BlockSpec((1, 8, 128), lambda i: (i, 0, 0)),
        compiler_params=pltpu.CompilerParams(
            # Per-tile partial sums -> no carried accumulator, so the batch
            # axis can be sharded across TensorCores (v7x megacore).
            dimension_semantics=("parallel",),
            vmem_limit_bytes=vmem_limit),
    )(x, labels2d, centers)

    return jnp.sum(partials[:, 0, 0]) / jnp.float32(B) * jnp.float32(scale)


def _reference_center_loss(x, centers, labels, scale=1.0):
    """Pure-JAX mirror of the PyTorch forward (expansion + mask + clamp)."""
    B = x.shape[0]
    C = centers.shape[0]
    distmat = (jnp.sum(x ** 2, axis=1, keepdims=True)
               + jnp.sum(centers ** 2, axis=1, keepdims=True).T
               - 2.0 * jnp.dot(x, centers.T, precision=lax.Precision.HIGHEST))
    mask = (labels[:, None] == jnp.arange(C)[None, :]).astype(jnp.float32)
    dist = jnp.clip(distmat * mask, 1e-12, 1e12)
    return jnp.sum(dist) / B * scale


def center_loss(x, centers, labels, scale=1.0, block_rows=512, use_pallas=None):
    """CenterLoss_old.forward: x (B, D), centers (C, D), labels (B,) -> scalar."""
    if use_pallas is None:
        # Below ~32K streamed elements the pallas_call fixed overhead exceeds
        # the math; the fused XLA path wins for tiny shapes.
        use_pallas = x.shape[0] * x.shape[1] >= (1 << 15)
    if not use_pallas:
        return _reference_center_loss(x.astype(jnp.float32),
                                      centers.astype(jnp.float32),
                                      labels, scale)
    return _center_loss_pallas(x, centers, labels, scale, block_rows)


if __name__ == "__main__":
    # Deterministic synthetic setup (mirrors CenterLoss_old.__init__):
    #   num_classes = 16, feat_dim = 32, scale = 1.0
    num_classes = 16
    feat_dim = 32
    scale = 1.0

    key = jax.random.PRNGKey(0)
    k_centers, k_x, k_lbl, k_x2, k_lbl2 = jax.random.split(key, 5)

    # centers ~ randn then L2-normalized per row (as in __init__)
    centers = jax.random.normal(k_centers, (num_classes, feat_dim), jnp.float32)
    centers = centers / jnp.linalg.norm(centers, axis=-1, keepdims=True)

    # Case 1: small batch, single tile, no padding.
    batch = 8
    x = jax.random.normal(k_x, (batch, feat_dim), jnp.float32)
    labels = jax.random.randint(k_lbl, (batch,), 0, num_classes, jnp.int32)
    loss = center_loss(x, centers, labels, scale=scale, use_pallas=True)
    jax.block_until_ready(loss)
    ref = _reference_center_loss(x, centers, labels, scale=scale)
    assert jnp.allclose(loss, ref, rtol=1e-5, atol=1e-4), (loss, ref)

    # Case 2: multi-tile grid with a padded last tile (exercises the parallel
    # per-tile partial sums and the pl.when-gated padded-row mask).
    batch2 = 13
    x2 = jax.random.normal(k_x2, (batch2, feat_dim), jnp.float32)
    labels2 = jax.random.randint(k_lbl2, (batch2,), 0, num_classes, jnp.int32)
    loss2 = center_loss(x2, centers, labels2, scale=scale, block_rows=8,
                        use_pallas=True)
    jax.block_until_ready(loss2)
    ref2 = _reference_center_loss(x2, centers, labels2, scale=scale)
    assert jnp.allclose(loss2, ref2, rtol=1e-5, atol=1e-4), (loss2, ref2)

    print("KERNEL_OK")
</pallas_src>

<mosaic_0001>
module attributes {stable_mosaic.version = 11 : i64} {
  func.func @_center_loss_kernel(%arg0: i32, %arg1: memref<8x32xf32, #tpu.memory_space<vmem>>, %arg2: memref<8x1xi32, #tpu.memory_space<vmem>>, %arg3: memref<16x32xf32, #tpu.memory_space<vmem>>, %arg4: memref<1x8x128xf32, #tpu.memory_space<vmem>>) attributes {dimension_semantics = [#tpu.dimension_semantics<parallel>], iteration_bounds = array<i64: 1>, scalar_prefetch = 0 : i64, scratch_operands = 0 : i64, tpu.core_type = #tpu.core_type<tc>, window_params = [{transform_indices = @transform_0, window_bounds = array<i64: 8, 32>}, {transform_indices = @transform_1, window_bounds = array<i64: 8, 1>}, {pipeline_mode = #tpu.pipeline_mode<synchronous>, transform_indices = @transform_2, window_bounds = array<i64: 16, 32>}, {transform_indices = @transform_3, window_bounds = array<i64: 1, 8, 128>}]} {
    %c0 = arith.constant 0 : index
    %c0_0 = arith.constant 0 : index
    %0 = vector.load %arg1[%c0, %c0_0] : memref<8x32xf32, #tpu.memory_space<vmem>>, vector<8x32xf32>
    %c0_1 = arith.constant 0 : index
    %c0_2 = arith.constant 0 : index
    %1 = vector.load %arg2[%c0_1, %c0_2] : memref<8x1xi32, #tpu.memory_space<vmem>>, vector<8x1xi32>
    %c0_3 = arith.constant 0 : index
    %c0_4 = arith.constant 0 : index
    %2 = vector.load %arg3[%c0_3, %c0_4] : memref<16x32xf32, #tpu.memory_space<vmem>>, vector<16x32xf32>
    %3 = tpu.iota {dimensions = array<i32: 1>} : vector<8x16xi32>
    %4 = vector.broadcast %1 : vector<8x1xi32> to vector<8x16xi32>
    %5 = arith.cmpi eq, %3, %4 : vector<8x16xi32>
    %6 = arith.extui %5 : vector<8x16xi1> to vector<8x16xi32>
    %7 = arith.sitofp %6 : vector<8x16xi32> to vector<8x16xf32>
    %cst = arith.constant dense<0.000000e+00> : vector<8x32xf32>
    %8 = tpu.matmul %7, %2, %cst {dimension_numbers = #tpu.dot_dimension_numbers<[1], [0], [0], [1], [0, 0, 1, 1], [], []>} : vector<8x16xf32>, vector<16x32xf32>, vector<8x32xf32> -> vector<8x32xf32>
    %9 = arith.subf %0, %8 : vector<8x32xf32>
    %10 = arith.mulf %9, %9 : vector<8x32xf32>
    %cst_5 = arith.constant dense<0.000000e+00> : vector<8xf32>
    %11 = vector.multi_reduction <add>, %10, %cst_5 [1] : vector<8x32xf32> to vector<8xf32>
    %12 = vector.shape_cast %11 : vector<8xf32> to vector<8x1xf32>
    %cst_6 = arith.constant 9.99999996E-13 : f32
    %cst_7 = arith.constant 9.99999995E+11 : f32
    %13 = vector.broadcast %cst_6 : f32 to vector<8x1xf32>
    %14 = arith.maximumf %13, %12 : vector<8x1xf32>
    %15 = vector.broadcast %cst_7 : f32 to vector<8x1xf32>
    %16 = arith.minimumf %15, %14 : vector<8x1xf32>
    %cst_8 = arith.constant 1.500000e-11 : f32
    %17 = vector.broadcast %cst_8 : f32 to vector<8x1xf32>
    %18 = arith.addf %16, %17 : vector<8x1xf32>
    %19 = vector.shape_cast %18 : vector<8x1xf32> to vector<1x8x1xf32>
    %cst_9 = arith.constant dense<0.000000e+00> : vector<1xf32>
    %20 = vector.multi_reduction <add>, %19, %cst_9 [1, 2] : vector<1x8x1xf32> to vector<1xf32>
    %21 = vector.shape_cast %20 : vector<1xf32> to vector<1x1x1xf32>
    %22 = vector.extract %21[0, 0, 0] : f32 from vector<1x1x1xf32>
    %cst_10 = arith.constant 0.000000e+00 : f32
    %23 = vector.broadcast %cst_10 : f32 to vector<1x8x128xf32>
    %24 = vector.broadcast %22 : f32 to vector<1x8x128xf32>
    %25 = arith.addf %23, %24 : vector<1x8x128xf32>
    %c0_11 = arith.constant 0 : index
    %c0_12 = arith.constant 0 : index
    %c0_13 = arith.constant 0 : index
    %26 = vector.load %arg4[%c0_11, %c0_12, %c0_13] : memref<1x8x128xf32, #tpu.memory_space<vmem>>, vector<1x8x128xf32>
    tpu.vector_store %arg4[%c0_11, %c0_12, %c0_13], %25 {strides = array<i32>} : memref<1x8x128xf32, #tpu.memory_space<vmem>>, vector<1x8x128xf32>,
    return
  }
  func.func @transform_0(%arg0: i32) -> (i32, i32) {
    %c0_i32 = arith.constant 0 : i32
    %c0_i32_0 = arith.constant 0 : i32
    return %arg0, %c0_i32 : i32, i32
  }
  func.func @transform_1(%arg0: i32) -> (i32, i32) {
    %c0_i32 = arith.constant 0 : i32
    %c0_i32_0 = arith.constant 0 : i32
    return %arg0, %c0_i32 : i32, i32
  }
  func.func @transform_2(%arg0: i32) -> (i32, i32) {
    %c0_i32 = arith.constant 0 : i32
    %c0_i32_0 = arith.constant 0 : i32
    %c0_i32_1 = arith.constant 0 : i32
    return %c0_i32, %c0_i32_0 : i32, i32
  }
  func.func @transform_3(%arg0: i32) -> (i32, i32, i32) {
    %c0_i32 = arith.constant 0 : i32
    %c0_i32_0 = arith.constant 0 : i32
    %c0_i32_1 = arith.constant 0 : i32
    return %arg0, %c0_i32, %c0_i32_0 : i32, i32, i32
  }
}

</mosaic_0001>

<bundles_post_ra>
// kernel: tpu_custom_call.1
= control target key start
LH: loop header
LB: loop body
LE: loop exit
PB: predicated region body
PF: predicated region fallthrough
CT: control target
= control target key end

     0   :  { %8 = vsyncpa [#allocation3], 0  ;;  %s258_s0 = inlined_call_operand.vmem [shape: f32[8,32], index: 0, kind: input, shape index: {}]   ;;  %s259_s1 = inlined_call_operand.vmem [shape: s32[8,1], index: 1, kind: input, shape index: {}]   ;;  %s260_s2 = inlined_call_operand.hbm [shape: f32[16,32], index: 2, kind: input, shape index: {}]   ;;  %s261_s3 = inlined_call_operand.hbm [shape: f32[1,8,128], index: 3, kind: output, shape index: {}]  }
   0x1   :  { %9 = vsyncpa [#allocation4], 0  ;;  %s219_s12 = smov [#allocation2]  }
   0x2   :  { %s19_s13 = sshll.u32 %s219_s12, 4  ;;  %s20_s13 = int_to_ptr.vmem [resolvable:$true] %s19_s13 }
   0x3   :  { %s183_s14 = scalar_lea.vmem %s20_s13, 256  ;;  %p188_p1 = scmp.lt.s32.totalorder %s20_s13, %s20_s13 }
   0x4   :  { %p184_p0 = scmp.ne.s32.totalorder %s20_s13, %s183_s14  ;;  %p189_p2 = scmp.lt.s32.totalorder %s183_s14, %s183_s14 }
   0x6   :  { %p190_p3 = por %p189_p2, %p188_p1 }
   0x8   :  { %p191_p4 = pnand %p190_p3, %p184_p0 }
   0xa   :  { %194 = shalt.err (!%p191_p4)
}
   0xb   :  { %s220_s15 = smov 128   ;;  %s221_s16 = smov 8  }
   0xc   :  { %25 = dma.hbm_to_vmem [thread:$0]  %s260_s2, 256, %s20_s13, [#allocation3], %s220_s15, %s220_s15, %s221_s16  }
   0xd   :  { %215 = dma.done.wait [#allocation3], 256  }
   0xe   :  { %216 = vsyncadd [#allocation3], 4294967040  ;;  %v222_v0 = vmov 0   ;;  %v223_v1 = vmov 0.0   ;;  %vm224_vm0 = vmmov 0   ;;  %v30_v2 = vld [vmem:[%s259_s1] sm:$0xff]  ;;  %v33_v5 = vlaneseq }
   0xf   :  { %174 = vset.pattern.permute.xlu0 %v222_v0  ;;  %158 = vmatprep.subr.mxu0 %v223_v1  ;;  %v32_v3 = vld [vmem:[#allocation2 + $0x8] sm:$0xff]  ;;  %v31_v4 = vld [vmem:[#allocation2] sm:$0xff]  ;;  %vm41_vm1 = vcmask 130048   ;;  %vm117_vm3 = vcmask 261120   ;;  %vm124_vm4 = vcmask 7168  }
  0x10   :  { %162 = vmatprep.mubr.msk.f32.mxu0 %vm224_vm0, %v223_v1  ;;  %36 = vperm.xlu0 %174, %v30_v2   ;;  %v34_v6 = vand.u32 127, %v33_v5  ;;  %v29_v9 = vld [vmem:[%s258_s0] sm:$0xff]  ;;  %s225_s0 = smov [#allocation5]  }
  0x11   :  { %159 = vmatpush3.msra.mxu0 %v32_v3  ;;  %s144_s1 = sshll.u32 %s225_s0, 4  ;;  %s145_s1 = int_to_ptr.vmem [resolvable:$true] %s144_s1 }
  0x12   :  { %160 = vmatprep.subr.mxu0 %v223_v1  ;;  %s195_s23 = scalar_lea.vmem %s145_s1, 128  ;;  %p200_p6 = scmp.lt.s32.totalorder %s145_s1, %s145_s1 }
  0x13   :  { %161 = vmatpush3.msra.mxu0 %v31_v4  ;;  %p196_p5 = scmp.ne.s32.totalorder %s145_s1, %s195_s23  ;;  %p201_p7 = scmp.lt.s32.totalorder %s195_s23, %s195_s23 }
  0x15   :  { %p202_p8 = por %p201_p7, %p200_p6 }
  0x17   :  { %p203_p9 = pnand %p202_p8, %p196_p5 }
  0x8b   :  { %v37_v7 = vpop.permute.xlu0 %36 }
  0x8c   :  { %vm38_vm2 = vcmp.eq.s32.totalorder %v34_v6, %v37_v7 }
  0x8d   :  { %v153_v8 = vsel %vm38_vm2, 1.0, %v223_v1 }
  0x8e   :  { %163 = vmatmul.mubr.msk.f32.vlgmr.msra.gmra.mxu0 %vm41_vm1, %v153_v8 }
 0x14e   :  { %v111_v10 = vpop.f32.mrf.mxu0 }
 0x14f   :  { %v115_v11 = vsub.f32 %v29_v9, %v111_v10 }
 0x150   :  { %v164_v12 = vpop.f32.mrf.mxu0 }
 0x151   :  { %v116_v13 = vmul.f32 %v115_v11, %v115_v11 }
 0x153   :  { %v118_v14 = vsel %vm117_vm3, %v116_v13, 0.0 }
 0x154   :  { %119 = vadd.xlane.f32.xlu0 %v118_v14 }
 0x1dd   :  { %v120_v15 = vpop.xlane.xlu0 %119 }
 0x1de   :  { %v121_v16 = vmax.f32 %v120_v15, 1e-12 }
 0x1e0   :  { %v122_v17 = vmin.f32 %v121_v16, 1e+12 }
 0x1e2   :  { %v123_v18 = vadd.f32 1.5e-11, %v122_v17 }
 0x1e4   :  { %v125_v19 = vsel %vm124_vm4, %v123_v18, 0.0 }
 0x1e5   :  { %126 = vadd.xlane.f32.xlu1 %v125_v19 }
 0x26e   :  { %v127_v20 = vpop.xlane.xlu1 %126 }
 0x26f   :  { %v128_v21 = vrot.slane %v127_v20, 4 }
 0x271   :  { %v129_v22 = vadd.f32 %v128_v21, %v127_v20 }
 0x273   :  { %v130_v23 = vrot.slane %v129_v22, 2 }
 0x275   :  { %v131_v24 = vadd.f32 %v130_v23, %v129_v22 }
 0x277   :  { %v132_v25 = vrot.slane %v131_v24, 1 }
 0x279   :  { %v133_v26 = vadd.f32 %v132_v25, %v131_v24 }
 0x27b   :  { %165 = vpush %v133_v26 }
 0x2ac   :  { %s166_s22 = spop %165 }
 0x2ad   :  { %v135_v27 = vstv %s166_s22 }
 0x2ae   :  { %137 = vst [vmem:[#allocation5] sm:$0xff] %v135_v27 }
 0x2af   :  { %206 = shalt.err (!%p203_p9)
}
 0x2b0   :  { %147 = dma.vmem_to_hbm [thread:$0]  %s145_s1, 128, %s261_s3, [#allocation4]  }
 0x2b1   :  { %217 = dma.done.wait [#allocation4], 128  }
 0x2b2   :  { %218 = vsyncadd [#allocation4], 4294967168 }
 0x2b3   :  { %151 = vsyncpa [#allocation3], 1 }
 0x2b4   :  { %152 = vsyncpa [#allocation4], 1 }

</bundles_post_ra>
